<compile_context>
chip_gen: v7x
topology: tpu7x:2x2x1
jax: 0.10.0
libtpu: 0.0.40
codegen_flags: <defaults>
</compile_context>

<pallas_src>
import functools

import jax
import jax.numpy as jnp
from jax.experimental import pallas as pl
from jax.experimental.pallas import tpu as pltpu

EPS = 1e-8


def _kl_div_kernel(pred_ref, target_ref, out_ref, *, n_rows, tb, mask_rows):
    # (TB, D) slab covering TB samples; compute in f32 regardless of HBM dtype.
    p = pred_ref[...].astype(jnp.float32)
    t = target_ref[...].astype(jnp.float32)

    if mask_rows:
        # Last N-block is partial: zero out rows >= n_rows BEFORE the row sums
        # so stale VMEM contents cannot leak into sum_p/sum_t or the KL term.
        row = pl.program_id(0) * tb + jax.lax.broadcasted_iota(
            jnp.int32, (tb, 1), 0)
        valid = row < n_rows
        p = jnp.where(valid, p, 0.0)
        t = jnp.where(valid, t, 0.0)

    # Per-sample sums -> per-sample scalar reciprocal (O(TB) EUP work); the
    # normalization itself is a cheap VALU broadcast-multiply.
    sum_p = jnp.sum(p, axis=-1, keepdims=True)          # (TB, 1)
    sum_t = jnp.sum(t, axis=-1, keepdims=True)          # (TB, 1)
    inv_p = pl.reciprocal(sum_p + EPS, approx=False)    # 1 / (sum_pred + eps)
    inv_t = pl.reciprocal(sum_t + EPS, approx=False)    # 1 / (sum_target + eps)

    pn = p * inv_p
    tn = t * inv_t

    # KL term with the per-element divide removed algebraically:
    #   tn * log(eps + tn/(pn+eps))  ~=  tn * (log(tn+eps) - log(pn+eps))
    # (identical to ~1e-6 relative for prob-like inputs; masked/zero rows give
    #  tn == 0 => term == 0 exactly).  Two EUP log pushes, no divide.
    r = tn * (jnp.log(tn + EPS) - jnp.log(pn + EPS))

    # Raw partial sum for this chunk, broadcast into an aligned (1, 8, 128)
    # block so the store is an unmasked, lane-dense write.
    out_ref[...] = jnp.broadcast_to(jnp.sum(r), out_ref.shape)


def _round_up(x: int, m: int) -> int:
    return (x + m - 1) // m * m


def kl_div_loss(pred: jax.Array, target: jax.Array) -> jax.Array:
    if pred.shape != target.shape:
        raise ValueError(
            f"Predictions and targets must have the same shape, got "
            f"{pred.shape} and {target.shape}"
        )

    if pred.ndim == 4:
        b, s, h, w = pred.shape
        n = b * s
    elif pred.ndim == 3:
        n, h, w = pred.shape
    else:
        raise ValueError(f"Expected 3-D or 4-D input, got {pred.ndim}-D")

    d = h * w
    pred2 = pred.reshape(n, d)
    target2 = target.reshape(n, d)
    itemsize = jnp.dtype(pred2.dtype).itemsize

    # ---- Generation-aware VMEM budget --------------------------------------
    try:
        vmem_cap = int(pltpu.get_tpu_info().vmem_capacity_bytes)
    except Exception:  # pragma: no cover - conservative fallback (v7x-sized)
        vmem_cap = 64 * 1024 * 1024
    # <= ~48 MiB on v7x (64 MiB physical), <= 96 MiB on v5e/v6e (128 MiB).
    total_budget = min((vmem_cap * 3) // 4, 96 * 1024 * 1024)

    # Peak VMEM per row of block:
    #   2 inputs x 2 pipeline buffers (HBM dtype) + ~4 f32 block temporaries.
    per_row_bytes = d * (4 * itemsize + 4 * 4)
    if 8 * per_row_bytes > total_budget:
        # TODO(synk): add a D-tiling reduction grid axis (per-row partial sums
        # in VMEM scratch) for very wide feature maps instead of erroring.
        raise ValueError(
            f"Feature dim {d} is too wide for a single VMEM block: "
            f"minimum block needs {8 * per_row_bytes} bytes "
            f"> {total_budget} bytes budget"
        )

    # Row tile: ~8 MiB per input block (in the HBM dtype), capped by the VMEM
    # budget (which also accounts for the f32 temporaries), multiple of 8.
    block_target = 8 * 1024 * 1024
    tb_block = max(1, block_target // max(1, d * itemsize))
    tb_vmem = max(1, total_budget // per_row_bytes)
    tb = max(8, min(tb_block, tb_vmem) // 8 * 8)
    tb = min(tb, _round_up(n, 8))

    # Keep >= 2 grid chunks (and best-effort even) so both v7x TensorCores get
    # balanced work under ("parallel",) semantics.
    if n > 8:
        tb = min(tb, _round_up(pl.cdiv(n, 2), 8))
    num_chunks = pl.cdiv(n, tb)
    if num_chunks > 1 and num_chunks % 2 == 1:
        tb_even = max(8, _round_up(pl.cdiv(n, num_chunks + 1), 8))
        if pl.cdiv(n, tb_even) % 2 == 0:
            tb = tb_even
            num_chunks = pl.cdiv(n, tb)

    mask_rows = (n % tb) != 0

    kernel = functools.partial(
        _kl_div_kernel, n_rows=n, tb=tb, mask_rows=mask_rows)

    elems = n * d
    in_bytes = 2 * elems * itemsize
    cost = pl.CostEstimate(
        flops=12 * elems,
        transcendentals=2 * elems,            # two logs per element
        bytes_accessed=in_bytes + num_chunks * 8 * 128 * 4,
    )

    partials = pl.pallas_call(
        kernel,
        out_shape=jax.ShapeDtypeStruct((num_chunks, 8, 128), jnp.float32),
        grid_spec=pltpu.PrefetchScalarGridSpec(
            num_scalar_prefetch=0,
            grid=(num_chunks,),
            in_specs=[
                pl.BlockSpec((tb, d), lambda i: (i, 0)),
                pl.BlockSpec((tb, d), lambda i: (i, 0)),
            ],
            out_specs=pl.BlockSpec((1, 8, 128), lambda i: (i, 0, 0)),
        ),
        compiler_params=pltpu.CompilerParams(
            dimension_semantics=("parallel",),
            vmem_limit_bytes=int(total_budget),
        ),
        cost_estimate=cost,
    )(pred2, target2)

    # Partial raw sums per chunk -> mean over the TRUE effective batch size
    # (masked rows contribute exactly 0).
    return jnp.sum(partials[:, 0, 0]) / n


def _kl_div_loss_ref(pred: jax.Array, target: jax.Array) -> jax.Array:
    # Pure-JAX reference mirroring the PyTorch module exactly.
    if pred.ndim == 4:
        b, s, h, w = pred.shape
        pred = pred.reshape(b * s, h, w)
        target = target.reshape(b * s, h, w)
    n = pred.shape[0]
    p = pred.reshape(n, -1).astype(jnp.float32)
    t = target.reshape(n, -1).astype(jnp.float32)
    p = p / (jnp.sum(p, axis=1, keepdims=True) + EPS)
    t = t / (jnp.sum(t, axis=1, keepdims=True) + EPS)
    r = t * jnp.log(EPS + t / (p + EPS))
    return jnp.mean(jnp.sum(r, axis=1))


if __name__ == "__main__":
    key = jax.random.PRNGKey(0)
    k1, k2 = jax.random.split(key)
    # (batch=2, sequence=4, height=16, width=16); positive values (prob-like).
    pred = jax.random.uniform(k1, (2, 4, 16, 16), dtype=jnp.float32) + 0.01
    target = jax.random.uniform(k2, (2, 4, 16, 16), dtype=jnp.float32) + 0.01

    loss = kl_div_loss(pred, target)
    jax.block_until_ready(loss)

    ref = _kl_div_loss_ref(pred, target)
    # Tolerance accounts for f32 accumulation-order differences and the
    # algebraic log-difference form (deviates ~1e-6 relative from the ref).
    assert jnp.allclose(loss, ref, rtol=5e-4, atol=1e-6), (loss, ref)

    print("KERNEL_OK")
</pallas_src>

<mosaic_0001>
module attributes {stable_mosaic.version = 11 : i64} {
  func.func @_kl_div_kernel(%arg0: i32, %arg1: memref<8x256xf32, #tpu.memory_space<vmem>>, %arg2: memref<8x256xf32, #tpu.memory_space<vmem>>, %arg3: memref<1x8x128xf32, #tpu.memory_space<vmem>>) attributes {dimension_semantics = [#tpu.dimension_semantics<parallel>], iteration_bounds = array<i64: 1>, scalar_prefetch = 0 : i64, scratch_operands = 0 : i64, tpu.core_type = #tpu.core_type<tc>, window_params = [{transform_indices = @transform_0, window_bounds = array<i64: 8, 256>}, {transform_indices = @transform_1, window_bounds = array<i64: 8, 256>}, {transform_indices = @transform_2, window_bounds = array<i64: 1, 8, 128>}]} {
    %c0 = arith.constant 0 : index
    %c0_0 = arith.constant 0 : index
    %0 = vector.load %arg1[%c0, %c0_0] : memref<8x256xf32, #tpu.memory_space<vmem>>, vector<8x256xf32>
    %c0_1 = arith.constant 0 : index
    %c0_2 = arith.constant 0 : index
    %1 = vector.load %arg2[%c0_1, %c0_2] : memref<8x256xf32, #tpu.memory_space<vmem>>, vector<8x256xf32>
    %cst = arith.constant dense<0.000000e+00> : vector<8xf32>
    %2 = vector.multi_reduction <add>, %0, %cst [1] : vector<8x256xf32> to vector<8xf32>
    %3 = vector.shape_cast %2 : vector<8xf32> to vector<8x1xf32>
    %cst_3 = arith.constant dense<0.000000e+00> : vector<8xf32>
    %4 = vector.multi_reduction <add>, %1, %cst_3 [1] : vector<8x256xf32> to vector<8xf32>
    %5 = vector.shape_cast %4 : vector<8xf32> to vector<8x1xf32>
    %cst_4 = arith.constant 9.99999993E-9 : f32
    %6 = vector.broadcast %cst_4 : f32 to vector<8x1xf32>
    %7 = arith.addf %3, %6 : vector<8x1xf32>
    %8 = tpu.reciprocal %7 : vector<8x1xf32> -> vector<8x1xf32>
    %cst_5 = arith.constant 9.99999993E-9 : f32
    %9 = vector.broadcast %cst_5 : f32 to vector<8x1xf32>
    %10 = arith.addf %5, %9 : vector<8x1xf32>
    %11 = tpu.reciprocal %10 : vector<8x1xf32> -> vector<8x1xf32>
    %12 = vector.broadcast %8 : vector<8x1xf32> to vector<8x256xf32>
    %13 = arith.mulf %0, %12 : vector<8x256xf32>
    %14 = vector.broadcast %11 : vector<8x1xf32> to vector<8x256xf32>
    %15 = arith.mulf %1, %14 : vector<8x256xf32>
    %cst_6 = arith.constant 9.99999993E-9 : f32
    %16 = vector.broadcast %cst_6 : f32 to vector<8x256xf32>
    %17 = arith.addf %15, %16 : vector<8x256xf32>
    %18 = math.log %17 : vector<8x256xf32>
    %cst_7 = arith.constant 9.99999993E-9 : f32
    %19 = vector.broadcast %cst_7 : f32 to vector<8x256xf32>
    %20 = arith.addf %13, %19 : vector<8x256xf32>
    %21 = math.log %20 : vector<8x256xf32>
    %22 = arith.subf %18, %21 : vector<8x256xf32>
    %23 = arith.mulf %15, %22 : vector<8x256xf32>
    %24 = vector.shape_cast %23 : vector<8x256xf32> to vector<1x8x256xf32>
    %cst_8 = arith.constant dense<0.000000e+00> : vector<1xf32>
    %25 = vector.multi_reduction <add>, %24, %cst_8 [1, 2] : vector<1x8x256xf32> to vector<1xf32>
    %26 = vector.shape_cast %25 : vector<1xf32> to vector<1x1x1xf32>
    %27 = vector.extract %26[0, 0, 0] : f32 from vector<1x1x1xf32>
    %28 = vector.broadcast %27 : f32 to vector<1x8x128xf32>
    %c0_9 = arith.constant 0 : index
    %c0_10 = arith.constant 0 : index
    %c0_11 = arith.constant 0 : index
    %29 = vector.load %arg3[%c0_9, %c0_10, %c0_11] : memref<1x8x128xf32, #tpu.memory_space<vmem>>, vector<1x8x128xf32>
    tpu.vector_store %arg3[%c0_9, %c0_10, %c0_11], %28 {strides = array<i32>} : memref<1x8x128xf32, #tpu.memory_space<vmem>>, vector<1x8x128xf32>,
    return
  }
  func.func @transform_0(%arg0: i32) -> (i32, i32) {
    %c0_i32 = arith.constant 0 : i32
    %c0_i32_0 = arith.constant 0 : i32
    return %arg0, %c0_i32 : i32, i32
  }
  func.func @transform_1(%arg0: i32) -> (i32, i32) {
    %c0_i32 = arith.constant 0 : i32
    %c0_i32_0 = arith.constant 0 : i32
    return %arg0, %c0_i32 : i32, i32
  }
  func.func @transform_2(%arg0: i32) -> (i32, i32, i32) {
    %c0_i32 = arith.constant 0 : i32
    %c0_i32_0 = arith.constant 0 : i32
    %c0_i32_1 = arith.constant 0 : i32
    return %arg0, %c0_i32, %c0_i32_0 : i32, i32, i32
  }
}

</mosaic_0001>

<bundles_post_ra>
// kernel: tpu_custom_call.1
= control target key start
LH: loop header
LB: loop body
LE: loop exit
PB: predicated region body
PF: predicated region fallthrough
CT: control target
= control target key end

     0   :  { %7 = vsyncpa [#allocation3], 0  ;;  %s241_s0 = inlined_call_operand.hbm [shape: f32[8,256], index: 0, kind: input, shape index: {}]   ;;  %s242_s1 = inlined_call_operand.hbm [shape: f32[8,256], index: 1, kind: input, shape index: {}]   ;;  %s243_s2 = inlined_call_operand.hbm [shape: f32[1,8,128], index: 2, kind: output, shape index: {}]  }
   0x1   :  { %8 = vsyncpa [#allocation6], 0 }
   0x2   :  { %9 = vsyncpa [#allocation4], 0  ;;  %s187_s9 = smov [#allocation2]   ;;  %s188_s11 = smov [#allocation5]  }
   0x3   :  { %s16_s10 = sshll.u32 %s187_s9, 4  ;;  %s26_s12 = sshll.u32 %s188_s11, 4  ;;  %s17_s10 = int_to_ptr.vmem [resolvable:$true] %s16_s10  ;;  %s27_s12 = int_to_ptr.vmem [resolvable:$true] %s26_s12 }
   0x4   :  { %s115_s15 = scalar_lea.hbm %s241_s0, 256 }
   0x5   :  { %p116_p0 = scmp.ne.s32.totalorder %s241_s0, %s115_s15  ;;  %p119_p1 = scmp.lt.u32.totalorder %s115_s15, %s241_s0 }
   0x7   :  { %p121_p2 = pnand %p119_p1, %p116_p0 }
   0x9   :  { %124 = shalt.err (!%p121_p2)
}
   0xa   :  { %s125_s20 = scalar_lea.vmem %s17_s10, 256  ;;  %p130_p4 = scmp.lt.s32.totalorder %s17_s10, %s17_s10 }
   0xb   :  { %p126_p3 = scmp.ne.s32.totalorder %s17_s10, %s125_s20  ;;  %p131_p5 = scmp.lt.s32.totalorder %s125_s20, %s125_s20 }
   0xd   :  { %p132_p6 = por %p131_p5, %p130_p4 }
   0xf   :  { %p133_p7 = pnand %p132_p6, %p126_p3 }
  0x11   :  { %136 = shalt.err (!%p133_p7)
}
  0x12   :  { %19 = dma.hbm_to_vmem [thread:$0]  %s241_s0, 256, %s17_s10, [#allocation3]  }
  0x13   :  { %s137_s25 = scalar_lea.hbm %s242_s1, 256 }
  0x14   :  { %p138_p8 = scmp.ne.s32.totalorder %s242_s1, %s137_s25  ;;  %p141_p9 = scmp.lt.u32.totalorder %s137_s25, %s242_s1 }
  0x16   :  { %p143_p10 = pnand %p141_p9, %p138_p8 }
  0x18   :  { %146 = shalt.err (!%p143_p10)
}
  0x19   :  { %s147_s30 = scalar_lea.vmem %s27_s12, 256  ;;  %p152_p12 = scmp.lt.s32.totalorder %s27_s12, %s27_s12 }
  0x1a   :  { %p148_p11 = scmp.ne.s32.totalorder %s27_s12, %s147_s30  ;;  %p153_p13 = scmp.lt.s32.totalorder %s147_s30, %s147_s30 }
  0x1c   :  { %p154_p0 = por %p153_p13, %p152_p12 }
  0x1e   :  { %p155_p1 = pnand %p154_p0, %p148_p11 }
  0x20   :  { %158 = shalt.err (!%p155_p1)
}
  0x21   :  { %29 = dma.hbm_to_vmem [thread:$0]  %s242_s1, 256, %s27_s12, [#allocation6]  }
  0x22   :  { %181 = dma.done.wait [#allocation3], 256  }
  0x23   :  { %182 = vsyncadd [#allocation3], 4294967040 }
  0x24   :  { %183 = dma.done.wait [#allocation6], 256  }
  0x25   :  { %184 = vsyncadd [#allocation6], 4294967040  ;;  %v36_v0 = vld [vmem:[#allocation2] sm:$0xff]  ;;  %v37_v1 = vld [vmem:[#allocation2 + $0x8] sm:$0xff]  ;;  %s189_s1 = smov [#allocation7]  }
  0x26   :  { %v38_v2 = vld [vmem:[#allocation5] sm:$0xff]  ;;  %v40_v3 = vadd.f32 %v37_v1, %v36_v0  ;;  %v39_v4 = vld [vmem:[#allocation5 + $0x8] sm:$0xff]  ;;  %s88_s4 = sshll.u32 %s189_s1, 4  ;;  %s89_s4 = int_to_ptr.vmem [resolvable:$true] %s88_s4 }
  0x27   :  { %v43_v5 = vadd.f32 %v39_v4, %v38_v2  ;;  %s159_s6 = scalar_lea.vmem %s89_s4, 128  ;;  %p164_p3 = scmp.lt.s32.totalorder %s89_s4, %s89_s4 }
  0x28   :  { %41 = vadd.xlane.f32.xlu0 %v40_v3  ;;  %p160_p2 = scmp.ne.s32.totalorder %s89_s4, %s159_s6  ;;  %p165_p4 = scmp.lt.s32.totalorder %s159_s6, %s159_s6 }
  0x2a   :  { %p166_p5 = por %p165_p4, %p164_p3 }
  0x2c   :  { %44 = vadd.xlane.f32.xlu0 %v43_v5  ;;  %p167_p6 = pnand %p166_p5, %p160_p2 }
  0xb5   :  { %v42_v6 = vpop.xlane.xlu0 %41 }
  0xb6   :  { %v46_v7 = vadd.f32 1e-08, %v42_v6 }
  0xb8   :  { %103 = vrcp.f32 %v46_v7 }
  0xb9   :  { %v45_v8 = vpop.xlane.xlu0 %44 }
  0xba   :  { %v48_v9 = vadd.f32 1e-08, %v45_v8 }
  0xbc   :  { %105 = vrcp.f32 %v48_v9 }
  0xc2   :  { %v104_v10 = vpop.eup %103 }
  0xc3   :  { %v50_v11 = vmul.f32 %v104_v10, %v36_v0  ;;  %v51_v12 = vmul.f32 %v104_v10, %v37_v1 }
  0xc5   :  { %v60_v13 = vadd.f32 1e-08, %v50_v11  ;;  %v61_v15 = vadd.f32 1e-08, %v51_v12 }
  0xc6   :  { %v106_v14 = vpop.eup %105 }
  0xc7   :  { %v52_v16 = vmul.f32 %v106_v14, %v38_v2  ;;  %v53_v17 = vmul.f32 %v106_v14, %v39_v4  ;;  %107 = vlog2.f32 %v60_v13 }
  0xc8   :  { %109 = vlog2.f32 %v61_v15 }
  0xc9   :  { %v54_v18 = vadd.f32 1e-08, %v52_v16  ;;  %v55_v19 = vadd.f32 1e-08, %v53_v17 }
  0xcb   :  { %111 = vlog2.f32 %v54_v18 }
  0xcc   :  { %113 = vlog2.f32 %v55_v19 }
  0xd1   :  { %v108_v20 = vpop.eup %107 }
  0xd2   :  { %v110_v21 = vpop.eup %109  ;;  %v63_v25 = vmul.f32 0.6931472, %v108_v20 }
  0xd3   :  { %v65_v27 = vmul.f32 0.6931472, %v110_v21 }
  0xd5   :  { %v112_v22 = vpop.eup %111 }
  0xd6   :  { %v114_v23 = vpop.eup %113  ;;  %v57_v24 = vmul.f32 0.6931472, %v112_v22 }
  0xd7   :  { %v59_v26 = vmul.f32 0.6931472, %v114_v23 }
  0xd8   :  { %v66_v28 = vsub.f32 %v57_v24, %v63_v25 }
  0xd9   :  { %v67_v29 = vsub.f32 %v59_v26, %v65_v27 }
  0xda   :  { %v68_v30 = vmul.f32 %v66_v28, %v52_v16 }
  0xdb   :  { %v69_v31 = vmul.f32 %v67_v29, %v53_v17 }
  0xdd   :  { %v70_v32 = vadd.f32 %v69_v31, %v68_v30 }
  0xdf   :  { %71 = vadd.xlane.f32.xlu1 %v70_v32 }
 0x16c   :  { %v72_v33 = vpop.xlane.xlu1 %71 }
 0x16d   :  { %v73_v34 = vrot.slane %v72_v33, 4 }
 0x16f   :  { %v74_v35 = vadd.f32 %v73_v34, %v72_v33 }
 0x171   :  { %v75_v36 = vrot.slane %v74_v35, 2 }
 0x173   :  { %v76_v37 = vadd.f32 %v75_v36, %v74_v35 }
 0x175   :  { %v77_v38 = vrot.slane %v76_v37, 1 }
 0x177   :  { %v78_v39 = vadd.f32 %v77_v38, %v76_v37 }
 0x179   :  { %98 = vpush %v78_v39 }
 0x1aa   :  { %s99_s5 = spop %98 }
 0x1ab   :  { %v80_v40 = vstv %s99_s5 }
 0x1ac   :  { %81 = vst [vmem:[#allocation7] sm:$0xff] %v80_v40 }
 0x1ad   :  { %170 = shalt.err (!%p167_p6)
}
 0x1ae   :  { %s171_s9 = scalar_lea.hbm %s243_s2, 128 }
 0x1af   :  { %p172_p7 = scmp.ne.s32.totalorder %s243_s2, %s171_s9  ;;  %p175_p8 = scmp.lt.u32.totalorder %s171_s9, %s243_s2 }
 0x1b1   :  { %p177_p9 = pnand %p175_p8, %p172_p7 }
 0x1b3   :  { %180 = shalt.err (!%p177_p9)
}
 0x1b4   :  { %91 = dma.vmem_to_hbm [thread:$0]  %s89_s4, 128, %s243_s2, [#allocation4]  }
 0x1b5   :  { %185 = dma.done.wait [#allocation4], 128  }
 0x1b6   :  { %186 = vsyncadd [#allocation4], 4294967168 }
 0x1b7   :  { %95 = vsyncpa [#allocation3], 1 }
 0x1b8   :  { %96 = vsyncpa [#allocation6], 1 }
 0x1b9   :  { %97 = vsyncpa [#allocation4], 1 }

</bundles_post_ra>
